<compile_context>
chip_gen: v6e
topology: v6e:2x2x1
jax: 0.10.0
libtpu: 0.0.40
codegen_flags: <defaults>
</compile_context>

<pallas_src>
import functools

import jax
import jax.numpy as jnp
from jax.experimental import pallas as pl
from jax.experimental.pallas import tpu as pltpu

_LANE = 128            # lane width (last dim)
_SUBLANE = 8           # f32 sublane width (second-to-last dim)
_MAX_BATCH_TILE = 1024  # sweep 512-1024; mem-bound tiles hit ~85% roofline by 512

_SINGLE_BUFFER_OK = None   # resolved on the first kernel launch


def _round_up(n, m):
    return ((n + m - 1) // m) * m


def _cdiv(a, b):
    return -(-a // b)


def _make_kernel(num_linears, out_widths, input_dim, output_dim, use_skip):
    """Fused MLP kernel.  refs = (x, w_0..w_{L-1}, bias_pack, out).
    out_widths[i] = (possibly lane-padded) column count of layer i."""

    def kernel(x_ref, *refs):
        out_ref = refs[-1]
        bias_ref = refs[-2]
        w_refs = refs[:num_linears]

        x = x_ref[...]                        # (tb, input_dim)  f32
        biases = bias_ref[...]                # (L, max_width)   f32

        h = x
        for i in range(num_linears):
            w = w_refs[i][...]                # (K_i, out_widths[i])
            b = biases[i:i + 1, :out_widths[i]]
            h = jnp.dot(h, w, preferred_element_type=jnp.float32) + b
            if i < num_linears - 1:           # ReLU on every hidden layer
                h = jnp.maximum(h, 0.0)
        # h: (tb, output_dim)

        # skip = x @ eye(input_dim, output_dim) == x's first
        # min(input_dim, output_dim) columns -> pure VPU add, no MXU / no DMA.
        if use_skip and input_dim >= output_dim:
            skip = x if input_dim == output_dim else x[:, :output_dim]
            h = h + skip

        out_ref[...] = h.astype(out_ref.dtype)

        if use_skip and input_dim < output_dim:
            # Add x into the first input_dim output columns only; columns
            # [input_dim, output_dim) get zero skip, matching eye() semantics.
            out_ref[:, :input_dim] = out_ref[:, :input_dim] + x.astype(out_ref.dtype)

    return kernel


def init_nndense_params(key, input_dim, output_dim, hidden_dims):
    """Deterministic init mimicking nn.Linear's U(-1/sqrt(in), 1/sqrt(in)).
    Weights stored pre-transposed as (in, out); biases as (1, out)."""
    dims = [input_dim, *hidden_dims, output_dim]
    params = []
    for in_d, out_d in zip(dims, dims[1:]):
        key, kw, kb = jax.random.split(key, 3)
        bound = 1.0 / (in_d ** 0.5)
        w = jax.random.uniform(kw, (in_d, out_d), jnp.float32, -bound, bound)
        b = jax.random.uniform(kb, (1, out_d), jnp.float32, -bound, bound)
        params.append((w, b))
    return params


def pack_nndense_params(params):
    """One-time packing: hidden dims zero-padded to multiples of 128 (lane
    dense); the input dim and the final output dim stay unpadded so the x DMA
    and the output store carry no wasted bytes.  Zero padding keeps the math
    exact: padded weight rows/cols and biases are 0, so padded hidden
    activations are exactly 0 through ReLU and contribute nothing."""
    num_linears = len(params)
    input_dim = params[0][0].shape[0]

    out_widths = []
    for i, (w, _) in enumerate(params):
        if i < num_linears - 1:
            out_widths.append(_round_up(w.shape[1], _LANE))   # hidden: lane-pad
        else:
            out_widths.append(w.shape[1])                     # final: narrow
    in_widths = [input_dim] + out_widths[:-1]

    w_pads = []
    for i, (w, _) in enumerate(params):
        wp = jnp.zeros((in_widths[i], out_widths[i]), jnp.float32)
        wp = wp.at[: w.shape[0], : w.shape[1]].set(w)
        w_pads.append(wp)

    max_w = max(out_widths)
    bias_pack = jnp.zeros((num_linears, max_w), jnp.float32)
    for i, (_, b) in enumerate(params):
        bias_pack = bias_pack.at[i, : b.shape[1]].set(b[0])

    return tuple(w_pads), bias_pack


@functools.partial(jax.jit,
                   static_argnames=("output_dim", "use_skip", "single_buffer_params"))
def nndense_forward(x, w_list, bias_pack, *, output_dim, use_skip=True,
                    single_buffer_params=True):
    batch, input_dim = x.shape
    num_linears = len(w_list)
    out_widths = tuple(int(w.shape[1]) for w in w_list)
    assert out_widths[-1] == output_dim

    # ---- Balanced batch tiling -------------------------------------------
    # >=2 (even) tiles whenever batch allows, so v7x's two TensorCores both
    # get work; tiles are balanced so a batch just over a tile multiple does
    # not waste a nearly empty tile (300 -> pad 304, not 512).
    ntiles = max(_cdiv(batch, _MAX_BATCH_TILE), 1)
    if ntiles == 1 and batch > 2 * _SUBLANE:
        ntiles = 2
    if ntiles > 1 and ntiles % 2:
        ntiles += 1
    tb = _round_up(_cdiv(batch, ntiles), _SUBLANE)
    batch_pad = _round_up(batch, tb)
    grid = (batch_pad // tb,)

    x_in = x if batch_pad == batch else jnp.pad(x, ((0, batch_pad - batch), (0, 0)))

    kernel = _make_kernel(num_linears, out_widths, input_dim, output_dim, use_skip)

    # Weights & biases are grid-invariant: single-buffer them so they do not
    # pay double-buffered VMEM (matters under v7x's 64 MiB/TC budget).
    def _const_spec(shape):
        if single_buffer_params:
            return pl.BlockSpec(shape, lambda i: (0, 0),
                                pipeline_mode=pl.Buffered(1))
        return pl.BlockSpec(shape, lambda i: (0, 0))

    in_specs = [pl.BlockSpec((tb, input_dim), lambda i: (i, 0))]
    for w in w_list:
        in_specs.append(_const_spec(w.shape))
    in_specs.append(_const_spec(bias_pack.shape))
    out_specs = pl.BlockSpec((tb, output_dim), lambda i: (i, 0))

    # ---- VMEM budget & cost hint -----------------------------------------
    param_buf = 1 if single_buffer_params else 2
    param_bytes = param_buf * 4 * (sum(int(w.size) for w in w_list)
                                   + int(bias_pack.size))
    io_bytes = 2 * 4 * (tb * input_dim + tb * output_dim)     # double-buffered
    vmem_limit = int(min(max(2 * (param_bytes + io_bytes) + (8 << 20),
                             16 << 20), 48 << 20))

    flops = 2 * batch_pad * sum(int(w.shape[0]) * int(w.shape[1]) for w in w_list)
    bytes_accessed = 4 * (batch_pad * input_dim + batch_pad * output_dim
                          + sum(int(w.size) for w in w_list) + int(bias_pack.size))
    cost = pl.CostEstimate(flops=flops, transcendentals=0,
                           bytes_accessed=bytes_accessed)

    out_full = pl.pallas_call(
        kernel,
        out_shape=jax.ShapeDtypeStruct((batch_pad, output_dim), jnp.float32),
        grid=grid,
        in_specs=in_specs,
        out_specs=out_specs,
        compiler_params=pltpu.CompilerParams(
            dimension_semantics=("parallel",),
            vmem_limit_bytes=vmem_limit,
        ),
        cost_estimate=cost,
    )(x_in, *w_list, bias_pack)

    return out_full if batch_pad == batch else out_full[:batch]


def run_forward(x, w_list, bias_pack, *, output_dim, use_skip=True):
    """Launch the kernel, preferring single-buffered resident params; fall
    back once (and permanently) to default buffering if this Pallas build
    rejects pipeline_mode=pl.Buffered(1)."""
    global _SINGLE_BUFFER_OK
    if _SINGLE_BUFFER_OK is not False:
        try:
            out = jax.block_until_ready(
                nndense_forward(x, w_list, bias_pack, output_dim=output_dim,
                                use_skip=use_skip, single_buffer_params=True))
            _SINGLE_BUFFER_OK = True
            return out
        except Exception:
            if _SINGLE_BUFFER_OK is True:   # Buffered(1) known-good -> real bug
                raise
            _SINGLE_BUFFER_OK = False
    return jax.block_until_ready(
        nndense_forward(x, w_list, bias_pack, output_dim=output_dim,
                        use_skip=use_skip, single_buffer_params=False))


def nndense_reference(x, params, use_skip=True):
    """Pure-JAX reference matching the PyTorch forward()."""
    input_dim = x.shape[1]
    output_dim = params[-1][0].shape[1]
    h = x
    n = len(params)
    for i, (w, b) in enumerate(params):
        h = h @ w + b
        if i < n - 1:
            h = jnp.maximum(h, 0.0)
    if use_skip:
        C = jnp.eye(input_dim, output_dim, dtype=x.dtype)
        h = h + x @ C
    return h


if __name__ == "__main__":
    key = jax.random.PRNGKey(0)

    # ---- Config 1: input_dim > output_dim (spec-like toy sizes) -----------
    batch, input_dim, hidden_dims, output_dim = 8, 32, [64, 48], 16
    key, kx = jax.random.split(key)
    x = jax.random.normal(kx, (batch, input_dim), jnp.float32)
    params = init_nndense_params(key, input_dim, output_dim, hidden_dims)
    w_pads, bias_pack = pack_nndense_params(params)

    out = run_forward(x, w_pads, bias_pack, output_dim=output_dim, use_skip=True)
    ref = nndense_reference(x, params, use_skip=True)
    assert out.shape == (batch, output_dim)
    assert jnp.allclose(out, ref, atol=1e-3, rtol=1e-3), "mismatch (skip, small batch)"

    # Exercise a multi-tile balanced batch grid (300 -> 2 tiles of 152) and
    # the no-skip path.
    batch2 = 300
    key, kx2 = jax.random.split(key)
    x2 = jax.random.normal(kx2, (batch2, input_dim), jnp.float32)

    out2 = run_forward(x2, w_pads, bias_pack, output_dim=output_dim, use_skip=True)
    ref2 = nndense_reference(x2, params, use_skip=True)
    assert out2.shape == (batch2, output_dim)
    assert jnp.allclose(out2, ref2, atol=1e-3, rtol=1e-3), "mismatch (skip, tiled batch)"

    out3 = run_forward(x2, w_pads, bias_pack, output_dim=output_dim, use_skip=False)
    ref3 = nndense_reference(x2, params, use_skip=False)
    assert jnp.allclose(out3, ref3, atol=1e-3, rtol=1e-3), "mismatch (no-skip)"

    # ---- Config 2: input_dim < output_dim (sliced skip RMW path) ----------
    batch3, input_dim3, hidden_dims3, output_dim3 = 20, 16, [32], 24
    key, kx3 = jax.random.split(key)
    x3 = jax.random.normal(kx3, (batch3, input_dim3), jnp.float32)
    params3 = init_nndense_params(key, input_dim3, output_dim3, hidden_dims3)
    w_pads3, bias_pack3 = pack_nndense_params(params3)

    out4 = run_forward(x3, w_pads3, bias_pack3, output_dim=output_dim3, use_skip=True)
    ref4 = nndense_reference(x3, params3, use_skip=True)
    assert out4.shape == (batch3, output_dim3)
    assert jnp.allclose(out4, ref4, atol=1e-3, rtol=1e-3), "mismatch (skip, wide output)"

    print("KERNEL_OK")
</pallas_src>

<mosaic_0001>
module attributes {stable_mosaic.version = 11 : i64} {
  func.func @kernel(%arg0: i32, %arg1: memref<8x32xf32, #tpu.memory_space<vmem>>, %arg2: memref<32x128xf32, #tpu.memory_space<vmem>>, %arg3: memref<128x128xf32, #tpu.memory_space<vmem>>, %arg4: memref<128x16xf32, #tpu.memory_space<vmem>>, %arg5: memref<3x128xf32, #tpu.memory_space<vmem>>, %arg6: memref<8x16xf32, #tpu.memory_space<vmem>>) attributes {dimension_semantics = [#tpu.dimension_semantics<parallel>], iteration_bounds = array<i64: 1>, scalar_prefetch = 0 : i64, scratch_operands = 0 : i64, tpu.core_type = #tpu.core_type<tc>, window_params = [{transform_indices = @transform_0, window_bounds = array<i64: 8, 32>}, {pipeline_mode = #tpu.pipeline_mode<synchronous>, transform_indices = @transform_1, window_bounds = array<i64: 32, 128>}, {pipeline_mode = #tpu.pipeline_mode<synchronous>, transform_indices = @transform_2, window_bounds = array<i64: 128, 128>}, {pipeline_mode = #tpu.pipeline_mode<synchronous>, transform_indices = @transform_3, window_bounds = array<i64: 128, 16>}, {pipeline_mode = #tpu.pipeline_mode<synchronous>, transform_indices = @transform_4, window_bounds = array<i64: 3, 128>}, {transform_indices = @transform_5, window_bounds = array<i64: 8, 16>}]} {
    %c0 = arith.constant 0 : index
    %c0_0 = arith.constant 0 : index
    %0 = vector.load %arg1[%c0, %c0_0] : memref<8x32xf32, #tpu.memory_space<vmem>>, vector<8x32xf32>
    %c0_1 = arith.constant 0 : index
    %c0_2 = arith.constant 0 : index
    %1 = vector.load %arg5[%c0_1, %c0_2] : memref<3x128xf32, #tpu.memory_space<vmem>>, vector<3x128xf32>
    %c0_3 = arith.constant 0 : index
    %c0_4 = arith.constant 0 : index
    %2 = vector.load %arg2[%c0_3, %c0_4] : memref<32x128xf32, #tpu.memory_space<vmem>>, vector<32x128xf32>
    %3 = vector.extract_strided_slice %1 {offsets = [0, 0], sizes = [1, 128], strides = [1, 1]} : vector<3x128xf32> to vector<1x128xf32>
    %cst = arith.constant dense<0.000000e+00> : vector<8x128xf32>
    %4 = tpu.matmul %0, %2, %cst {dimension_numbers = #tpu.dot_dimension_numbers<[1], [0], [0], [1], [0, 0, 1, 1], [], []>} : vector<8x32xf32>, vector<32x128xf32>, vector<8x128xf32> -> vector<8x128xf32>
    %5 = vector.broadcast %3 : vector<1x128xf32> to vector<8x128xf32>
    %6 = arith.addf %4, %5 : vector<8x128xf32>
    %cst_5 = arith.constant 0.000000e+00 : f32
    %7 = vector.broadcast %cst_5 : f32 to vector<8x128xf32>
    %8 = arith.maximumf %6, %7 : vector<8x128xf32>
    %c0_6 = arith.constant 0 : index
    %c0_7 = arith.constant 0 : index
    %9 = vector.load %arg3[%c0_6, %c0_7] : memref<128x128xf32, #tpu.memory_space<vmem>>, vector<128x128xf32>
    %10 = vector.extract_strided_slice %1 {offsets = [1, 0], sizes = [1, 128], strides = [1, 1]} : vector<3x128xf32> to vector<1x128xf32>
    %cst_8 = arith.constant dense<0.000000e+00> : vector<8x128xf32>
    %11 = tpu.matmul %8, %9, %cst_8 {dimension_numbers = #tpu.dot_dimension_numbers<[1], [0], [0], [1], [0, 0, 1, 1], [], []>} : vector<8x128xf32>, vector<128x128xf32>, vector<8x128xf32> -> vector<8x128xf32>
    %12 = vector.broadcast %10 : vector<1x128xf32> to vector<8x128xf32>
    %13 = arith.addf %11, %12 : vector<8x128xf32>
    %cst_9 = arith.constant 0.000000e+00 : f32
    %14 = vector.broadcast %cst_9 : f32 to vector<8x128xf32>
    %15 = arith.maximumf %13, %14 : vector<8x128xf32>
    %c0_10 = arith.constant 0 : index
    %c0_11 = arith.constant 0 : index
    %16 = vector.load %arg4[%c0_10, %c0_11] : memref<128x16xf32, #tpu.memory_space<vmem>>, vector<128x16xf32>
    %17 = vector.extract_strided_slice %1 {offsets = [2, 0], sizes = [1, 16], strides = [1, 1]} : vector<3x128xf32> to vector<1x16xf32>
    %cst_12 = arith.constant dense<0.000000e+00> : vector<8x16xf32>
    %18 = tpu.matmul %15, %16, %cst_12 {dimension_numbers = #tpu.dot_dimension_numbers<[1], [0], [0], [1], [0, 0, 1, 1], [], []>} : vector<8x128xf32>, vector<128x16xf32>, vector<8x16xf32> -> vector<8x16xf32>
    %19 = vector.broadcast %17 : vector<1x16xf32> to vector<8x16xf32>
    %20 = arith.addf %18, %19 : vector<8x16xf32>
    %21 = vector.extract_strided_slice %0 {offsets = [0, 0], sizes = [8, 16], strides = [1, 1]} : vector<8x32xf32> to vector<8x16xf32>
    %22 = arith.addf %20, %21 : vector<8x16xf32>
    %c0_13 = arith.constant 0 : index
    %c0_14 = arith.constant 0 : index
    %23 = vector.load %arg6[%c0_13, %c0_14] : memref<8x16xf32, #tpu.memory_space<vmem>>, vector<8x16xf32>
    tpu.vector_store %arg6[%c0_13, %c0_14], %22 {strides = array<i32>} : memref<8x16xf32, #tpu.memory_space<vmem>>, vector<8x16xf32>,
    return
  }
  func.func @transform_0(%arg0: i32) -> (i32, i32) {
    %c0_i32 = arith.constant 0 : i32
    %c0_i32_0 = arith.constant 0 : i32
    return %arg0, %c0_i32 : i32, i32
  }
  func.func @transform_1(%arg0: i32) -> (i32, i32) {
    %c0_i32 = arith.constant 0 : i32
    %c0_i32_0 = arith.constant 0 : i32
    %c0_i32_1 = arith.constant 0 : i32
    return %c0_i32, %c0_i32_0 : i32, i32
  }
  func.func @transform_2(%arg0: i32) -> (i32, i32) {
    %c0_i32 = arith.constant 0 : i32
    %c0_i32_0 = arith.constant 0 : i32
    %c0_i32_1 = arith.constant 0 : i32
    return %c0_i32, %c0_i32_0 : i32, i32
  }
  func.func @transform_3(%arg0: i32) -> (i32, i32) {
    %c0_i32 = arith.constant 0 : i32
    %c0_i32_0 = arith.constant 0 : i32
    %c0_i32_1 = arith.constant 0 : i32
    return %c0_i32, %c0_i32_0 : i32, i32
  }
  func.func @transform_4(%arg0: i32) -> (i32, i32) {
    %c0_i32 = arith.constant 0 : i32
    %c0_i32_0 = arith.constant 0 : i32
    %c0_i32_1 = arith.constant 0 : i32
    return %c0_i32, %c0_i32_0 : i32, i32
  }
  func.func @transform_5(%arg0: i32) -> (i32, i32) {
    %c0_i32 = arith.constant 0 : i32
    %c0_i32_0 = arith.constant 0 : i32
    return %arg0, %c0_i32 : i32, i32
  }
}

module attributes {stable_mosaic.version = 11 : i64} {
  func.func @kernel(%arg0: i32, %arg1: memref<8x32xf32, #tpu.memory_space<vmem>>, %arg2: memref<32x128xf32, #tpu.memory_space<vmem>>, %arg3: memref<128x128xf32, #tpu.memory_space<vmem>>, %arg4: memref<128x16xf32, #tpu.memory_space<vmem>>, %arg5: memref<3x128xf32, #tpu.memory_space<vmem>>, %arg6: memref<8x16xf32, #tpu.memory_space<vmem>>) attributes {dimension_semantics = [#tpu.dimension_semantics<parallel>], iteration_bounds = array<i64: 1>, scalar_prefetch = 0 : i64, scratch_operands = 0 : i64, tpu.core_type = #tpu.core_type<tc>, window_params = [{transform_indices = @transform_0, window_bounds = array<i64: 8, 32>}, {pipeline_mode = #tpu.pipeline_mode<synchronous>, transform_indices = @transform_1, window_bounds = array<i64: 32, 128>}, {pipeline_mode = #tpu.pipeline_mode<synchronous>, transform_indices = @transform_2, window_bounds = array<i64: 128, 128>}, {pipeline_mode = #tpu.pipeline_mode<synchronous>, transform_indices = @transform_3, window_bounds = array<i64: 128, 16>}, {pipeline_mode = #tpu.pipeline_mode<synchronous>, transform_indices = @transform_4, window_bounds = array<i64: 3, 128>}, {transform_indices = @transform_5, window_bounds = array<i64: 8, 16>}]} {
    %c0 = arith.constant 0 : index
    %c0_0 = arith.constant 0 : index
    %0 = vector.load %arg1[%c0, %c0_0] : memref<8x32xf32, #tpu.memory_space<vmem>>, vector<8x32xf32>
    %c0_1 = arith.constant 0 : index
    %c0_2 = arith.constant 0 : index
    %1 = vector.load %arg5[%c0_1, %c0_2] : memref<3x128xf32, #tpu.memory_space<vmem>>, vector<3x128xf32>
    %c0_3 = arith.constant 0 : index
    %c0_4 = arith.constant 0 : index
    %2 = vector.load %arg2[%c0_3, %c0_4] : memref<32x128xf32, #tpu.memory_space<vmem>>, vector<32x128xf32>
    %3 = vector.extract_strided_slice %1 {offsets = [0, 0], sizes = [1, 128], strides = [1, 1]} : vector<3x128xf32> to vector<1x128xf32>
    %cst = arith.constant dense<0.000000e+00> : vector<8x128xf32>
    %4 = tpu.matmul %0, %2, %cst {dimension_numbers = #tpu.dot_dimension_numbers<[1], [0], [0], [1], [0, 0, 1, 1], [], []>} : vector<8x32xf32>, vector<32x128xf32>, vector<8x128xf32> -> vector<8x128xf32>
    %5 = vector.broadcast %3 : vector<1x128xf32> to vector<8x128xf32>
    %6 = arith.addf %4, %5 : vector<8x128xf32>
    %cst_5 = arith.constant 0.000000e+00 : f32
    %7 = vector.broadcast %cst_5 : f32 to vector<8x128xf32>
    %8 = arith.maximumf %6, %7 : vector<8x128xf32>
    %c0_6 = arith.constant 0 : index
    %c0_7 = arith.constant 0 : index
    %9 = vector.load %arg3[%c0_6, %c0_7] : memref<128x128xf32, #tpu.memory_space<vmem>>, vector<128x128xf32>
    %10 = vector.extract_strided_slice %1 {offsets = [1, 0], sizes = [1, 128], strides = [1, 1]} : vector<3x128xf32> to vector<1x128xf32>
    %cst_8 = arith.constant dense<0.000000e+00> : vector<8x128xf32>
    %11 = tpu.matmul %8, %9, %cst_8 {dimension_numbers = #tpu.dot_dimension_numbers<[1], [0], [0], [1], [0, 0, 1, 1], [], []>} : vector<8x128xf32>, vector<128x128xf32>, vector<8x128xf32> -> vector<8x128xf32>
    %12 = vector.broadcast %10 : vector<1x128xf32> to vector<8x128xf32>
    %13 = arith.addf %11, %12 : vector<8x128xf32>
    %cst_9 = arith.constant 0.000000e+00 : f32
    %14 = vector.broadcast %cst_9 : f32 to vector<8x128xf32>
    %15 = arith.maximumf %13, %14 : vector<8x128xf32>
    %c0_10 = arith.constant 0 : index
    %c0_11 = arith.constant 0 : index
    %16 = vector.load %arg4[%c0_10, %c0_11] : memref<128x16xf32, #tpu.memory_space<vmem>>, vector<128x16xf32>
    %17 = vector.extract_strided_slice %1 {offsets = [2, 0], sizes = [1, 16], strides = [1, 1]} : vector<3x128xf32> to vector<1x16xf32>
    %cst_12 = arith.constant dense<0.000000e+00> : vector<8x16xf32>
    %18 = tpu.matmul %15, %16, %cst_12 {dimension_numbers = #tpu.dot_dimension_numbers<[1], [0], [0], [1], [0, 0, 1, 1], [], []>} : vector<8x128xf32>, vector<128x16xf32>, vector<8x16xf32> -> vector<8x16xf32>
    %19 = vector.broadcast %17 : vector<1x16xf32> to vector<8x16xf32>
    %20 = arith.addf %18, %19 : vector<8x16xf32>
    %21 = vector.extract_strided_slice %0 {offsets = [0, 0], sizes = [8, 16], strides = [1, 1]} : vector<8x32xf32> to vector<8x16xf32>
    %22 = arith.addf %20, %21 : vector<8x16xf32>
    %c0_13 = arith.constant 0 : index
    %c0_14 = arith.constant 0 : index
    %23 = vector.load %arg6[%c0_13, %c0_14] : memref<8x16xf32, #tpu.memory_space<vmem>>, vector<8x16xf32>
    tpu.vector_store %arg6[%c0_13, %c0_14], %22 {strides = array<i32>} : memref<8x16xf32, #tpu.memory_space<vmem>>, vector<8x16xf32>,
    return
  }
  func.func @transform_0(%arg0: i32) -> (i32, i32) {
    %c0_i32 = arith.constant 0 : i32
    %c0_i32_0 = arith.constant 0 : i32
    return %arg0, %c0_i32 : i32, i32
  }
  func.func @transform_1(%arg0: i32) -> (i32, i32) {
    %c0_i32 = arith.constant 0 : i32
    %c0_i32_0 = arith.constant 0 : i32
    %c0_i32_1 = arith.constant 0 : i32
    return %c0_i32, %c0_i32_0 : i32, i32
  }
  func.func @transform_2(%arg0: i32) -> (i32, i32) {
    %c0_i32 = arith.constant 0 : i32
    %c0_i32_0 = arith.constant 0 : i32
    %c0_i32_1 = arith.constant 0 : i32
    return %c0_i32, %c0_i32_0 : i32, i32
  }
  func.func @transform_3(%arg0: i32) -> (i32, i32) {
    %c0_i32 = arith.constant 0 : i32
    %c0_i32_0 = arith.constant 0 : i32
    %c0_i32_1 = arith.constant 0 : i32
    return %c0_i32, %c0_i32_0 : i32, i32
  }
  func.func @transform_4(%arg0: i32) -> (i32, i32) {
    %c0_i32 = arith.constant 0 : i32
    %c0_i32_0 = arith.constant 0 : i32
    %c0_i32_1 = arith.constant 0 : i32
    return %c0_i32, %c0_i32_0 : i32, i32
  }
  func.func @transform_5(%arg0: i32) -> (i32, i32) {
    %c0_i32 = arith.constant 0 : i32
    %c0_i32_0 = arith.constant 0 : i32
    return %arg0, %c0_i32 : i32, i32
  }
}

</mosaic_0001>

<bundles_post_ra>
// kernel: nndense_forward.1
= control target key start
LH: loop header
LB: loop body
LE: loop exit
PB: predicated region body
PF: predicated region fallthrough
CT: control target
= control target key end

     0   :  { %10 = vsyncpa [#allocation3], 0  ;;  %s680_s0 = inlined_call_operand.vmem [shape: f32[8,32], index: 0, kind: input, shape index: {}]   ;;  %s681_s1 = inlined_call_operand.hbm [shape: f32[32,128], index: 1, kind: input, shape index: {}]   ;;  %s682_s2 = inlined_call_operand.vmem [shape: f32[128,128], index: 2, kind: input, shape index: {}]   ;;  %s683_s3 = inlined_call_operand.vmem [shape: f32[128,16], index: 3, kind: input, shape index: {}]   ;;  %s684_s4 = inlined_call_operand.vmem [shape: f32[3,128], index: 4, kind: input, shape index: {}]   ;;  %s685_s5 = inlined_call_operand.hbm [shape: f32[8,16], index: 5, kind: output, shape index: {}]  }
   0x1   :  { %11 = vsyncpa [#allocation4], 0  ;;  %s490_s18 = smov [#allocation2]  }
   0x2   :  { %s19_s19 = sshll.u32 %s490_s18, 4  ;;  %s20_s19 = int_to_ptr.vmem [resolvable:$true] %s19_s19 }
   0x3   :  { %s454_s20 = scalar_lea.vmem %s20_s19, 512  ;;  %p459_p1 = scmp.lt.s32.totalorder %s20_s19, %s20_s19 }
   0x4   :  { %p455_p0 = scmp.ne.s32.totalorder %s20_s19, %s454_s20  ;;  %p460_p2 = scmp.lt.s32.totalorder %s454_s20, %s454_s20 }
   0x6   :  { %p461_p3 = por %p460_p2, %p459_p1 }
   0x8   :  { %p462_p4 = pnand %p461_p3, %p455_p0 }
   0xa   :  { %465 = shalt.err (!%p462_p4)
}
   0xb   :  { %s491_s21 = smov 128   ;;  %s492_s22 = smov 8  }
   0xc   :  { %25 = dma.hbm_to_vmem [thread:$0]  %s681_s1, 512, %s20_s19, [#allocation3], %s491_s21, %s491_s21, %s492_s22  }
   0xd   :  { %486 = dma.done.wait [#allocation3], 512  }
   0xe   :  { %487 = vsyncadd [#allocation3], 4294966784  ;;  %v493_v0 = vmov 0.0   ;;  %vm494_vm0 = vmmov 0   ;;  %v40_v1 = vld [vmem:[#allocation2 + $0x18] sm:$0xff]  ;;  %v39_v2 = vld [vmem:[#allocation2 + $0x10] sm:$0xff]  ;;  %v41_v35 = vlaneseq }
   0xf   :  { %359 = vmatprep.subr.mxu0 %v493_v0  ;;  %367 = vmatprep.mubr.msk.f32.mxu0 %vm494_vm0, %v493_v0  ;;  %v135_v3 = vld [vmem:[%s682_s2 + $0x78] sm:$0xff]  ;;  %v38_v4 = vld [vmem:[#allocation2 + $0x8] sm:$0xff]  ;;  %v134_v5 = vld [vmem:[%s682_s2 + $0x70] sm:$0xff]  ;;  %vm45_vm1 = vcmask 261120   ;;  %vm302_vm2 = vcmask 130048  }
  0x10   :  { %370 = vmatprep.subr.mxu1 %v493_v0  ;;  %402 = vmatprep.mubr.msk.f32.mxu1 %vm494_vm0, %v493_v0  ;;  %v133_v6 = vld [vmem:[%s682_s2 + $0x68] sm:$0xff]  ;;  %v37_v7 = vld [vmem:[#allocation2] sm:$0xff]  ;;  %v131_v10 = vld [vmem:[%s682_s2 + $0x58] sm:$0xff]  ;;  %v42_v36 = vshrl.u32 %v41_v35, 7 }
  0x11   :  { %360 = vmatpush3.msra.mxu0 %v40_v1  ;;  %371 = vmatpush3.msra.mxu1 %v135_v3  ;;  %v550_v8 = vld [vmem:[%s680_s0] sm:$0xff]  ;;  %v130_v11 = vld [vmem:[%s682_s2 + $0x50] sm:$0xff]  ;;  %v129_v12 = vld [vmem:[%s682_s2 + $0x48] sm:$0xff]  ;;  %s495_s0 = smov [#allocation5]  }
  0x12   :  { %361 = vmatprep.subr.mxu0 %v493_v0  ;;  %372 = vmatprep.subr.mxu1 %v493_v0  ;;  %v132_v9 = vld [vmem:[%s682_s2 + $0x60] sm:$0xff]  ;;  %v127_v14 = vld [vmem:[%s682_s2 + $0x38] sm:$0xff]  ;;  %v126_v15 = vld [vmem:[%s682_s2 + $0x30] sm:$0xff]  ;;  %v43_v37 = vsub.s32 0, %v42_v36  ;;  %v138_v47 = vsub.s32 1, %v42_v36  ;;  %v229_v53 = vsub.s32 2, %v42_v36 }
  0x13   :  { %362 = vmatpush3.msra.mxu0 %v39_v2  ;;  %373 = vmatpush3.msra.mxu1 %v134_v5  ;;  %v128_v13 = vld [vmem:[%s682_s2 + $0x40] sm:$0xff]  ;;  %v125_v16 = vld [vmem:[%s682_s2 + $0x28] sm:$0xff]  ;;  %v123_v18 = vld [vmem:[%s682_s2 + $0x18] sm:$0xff] }
  0x14   :  { %363 = vmatprep.subr.mxu0 %v493_v0  ;;  %374 = vmatprep.subr.mxu1 %v493_v0  ;;  %v124_v17 = vld [vmem:[%s682_s2 + $0x20] sm:$0xff]  ;;  %v122_v19 = vld [vmem:[%s682_s2 + $0x10] sm:$0xff]  ;;  %v121_v20 = vld [vmem:[%s682_s2 + $0x8] sm:$0xff] }
  0x15   :  { %364 = vmatpush3.msra.mxu0 %v38_v4  ;;  %375 = vmatpush3.msra.mxu1 %v133_v6  ;;  %v120_v21 = vld [vmem:[%s682_s2] sm:$0xff]  ;;  %v226_v22 = vld [vmem:[%s683_s3 + $0x78] sm:$0xff]  ;;  %v225_v23 = vld [vmem:[%s683_s3 + $0x70] sm:$0xff]  ;;  %s310_s2 = sshll.u32 %s495_s0, 4  ;;  %s311_s2 = int_to_ptr.vmem [resolvable:$true] %s310_s2 }
  0x16   :  { %365 = vmatprep.subr.mxu0 %v493_v0  ;;  %376 = vmatprep.subr.mxu1 %v493_v0  ;;  %v224_v24 = vld [vmem:[%s683_s3 + $0x68] sm:$0xff]  ;;  %v223_v25 = vld [vmem:[%s683_s3 + $0x60] sm:$0xff]  ;;  %v222_v26 = vld [vmem:[%s683_s3 + $0x58] sm:$0xff]  ;;  %p471_p6 = scmp.lt.s32.totalorder %s311_s2, %s311_s2 }
  0x17   :  { %366 = vmatpush3.msra.mxu0 %v37_v7  ;;  %377 = vmatpush3.msra.mxu1 %v132_v9  ;;  %v221_v27 = vld [vmem:[%s683_s3 + $0x50] sm:$0xff]  ;;  %v220_v28 = vld [vmem:[%s683_s3 + $0x48] sm:$0xff]  ;;  %v219_v29 = vld [vmem:[%s683_s3 + $0x40] sm:$0xff] }
  0x18   :  { %368 = vmatmul.mubr.msk.f32.vlgmr.msra.gmra.mxu0 %vm45_vm1, %v550_v8  ;;  %378 = vmatprep.subr.mxu1 %v493_v0  ;;  %v218_v30 = vld [vmem:[%s683_s3 + $0x38] sm:$0xff]  ;;  %v217_v31 = vld [vmem:[%s683_s3 + $0x30] sm:$0xff]  ;;  %v216_v32 = vld [vmem:[%s683_s3 + $0x28] sm:$0xff] }
  0x19   :  { %405 = vmatprep.subr.mxu0 %v493_v0  ;;  %379 = vmatpush3.msra.mxu1 %v131_v10  ;;  %v215_v33 = vld [vmem:[%s683_s3 + $0x20] sm:$0xff]  ;;  %v214_v34 = vld [vmem:[%s683_s3 + $0x18] sm:$0xff]  ;;  %v213_v44 = vld [vmem:[%s683_s3 + $0x10] sm:$0xff] }
  0x1a   :  { %437 = vmatprep.mubr.msk.f32.mxu0 %vm494_vm0, %v493_v0  ;;  %380 = vmatprep.subr.mxu1 %v493_v0  ;;  %v36_v38 = vld [vmem:[%s684_s4] sm:$0x7]  ;;  %v212_v45 = vld [vmem:[%s683_s3 + $0x8] sm:$0xff] }
  0x1b   :  { %381 = vmatpush3.msra.mxu1 %v130_v11  ;;  %406 = vmatpush3.msra.mxu0 %v226_v22  ;;  %v44_v39 = vrot.slane %v36_v38, %v43_v37  ;;  %v211_v46 = vld [vmem:[%s683_s3] sm:$0xff]  ;;  %v139_v48 = vrot.slane %v36_v38, %v138_v47  ;;  %v230_v54 = vrot.slane %v36_v38, %v229_v53  ;;  %s466_s3 = scalar_lea.vmem %s311_s2, 128 }
  0x1c   :  { %382 = vmatprep.subr.mxu1 %v493_v0  ;;  %407 = vmatprep.subr.mxu0 %v493_v0  ;;  %p467_p5 = scmp.ne.s32.totalorder %s311_s2, %s466_s3  ;;  %p472_p7 = scmp.lt.s32.totalorder %s466_s3, %s466_s3 }
  0x1d   :  { %383 = vmatpush3.msra.mxu1 %v129_v12  ;;  %408 = vmatpush3.msra.mxu0 %v225_v23 }
  0x1e   :  { %384 = vmatprep.subr.mxu1 %v493_v0  ;;  %409 = vmatprep.subr.mxu0 %v493_v0  ;;  %p473_p8 = por %p472_p7, %p471_p6 }
  0x1f   :  { %385 = vmatpush3.msra.mxu1 %v128_v13  ;;  %410 = vmatpush3.msra.mxu0 %v224_v24 }
  0x20   :  { %386 = vmatprep.subr.mxu1 %v493_v0  ;;  %411 = vmatprep.subr.mxu0 %v493_v0  ;;  %p474_p9 = pnand %p473_p8, %p467_p5 }
  0x21   :  { %387 = vmatpush3.msra.mxu1 %v127_v14  ;;  %412 = vmatpush3.msra.mxu0 %v223_v25 }
  0x22   :  { %388 = vmatprep.subr.mxu1 %v493_v0  ;;  %413 = vmatprep.subr.mxu0 %v493_v0 }
  0x23   :  { %389 = vmatpush3.msra.mxu1 %v126_v15  ;;  %414 = vmatpush3.msra.mxu0 %v222_v26 }
  0x24   :  { %390 = vmatprep.subr.mxu1 %v493_v0  ;;  %415 = vmatprep.subr.mxu0 %v493_v0 }
  0x25   :  { %391 = vmatpush3.msra.mxu1 %v125_v16  ;;  %416 = vmatpush3.msra.mxu0 %v221_v27 }
  0x26   :  { %392 = vmatprep.subr.mxu1 %v493_v0  ;;  %417 = vmatprep.subr.mxu0 %v493_v0 }
  0x27   :  { %393 = vmatpush3.msra.mxu1 %v124_v17  ;;  %418 = vmatpush3.msra.mxu0 %v220_v28 }
  0x28   :  { %394 = vmatprep.subr.mxu1 %v493_v0  ;;  %419 = vmatprep.subr.mxu0 %v493_v0 }
  0x29   :  { %395 = vmatpush3.msra.mxu1 %v123_v18  ;;  %420 = vmatpush3.msra.mxu0 %v219_v29 }
  0x2a   :  { %396 = vmatprep.subr.mxu1 %v493_v0  ;;  %421 = vmatprep.subr.mxu0 %v493_v0 }
  0x2b   :  { %397 = vmatpush3.msra.mxu1 %v122_v19  ;;  %422 = vmatpush3.msra.mxu0 %v218_v30 }
  0x2c   :  { %398 = vmatprep.subr.mxu1 %v493_v0  ;;  %423 = vmatprep.subr.mxu0 %v493_v0 }
  0x2d   :  { %399 = vmatpush3.msra.mxu1 %v121_v20  ;;  %424 = vmatpush3.msra.mxu0 %v217_v31 }
  0x2e   :  { %400 = vmatprep.subr.mxu1 %v493_v0  ;;  %425 = vmatprep.subr.mxu0 %v493_v0 }
  0x2f   :  { %401 = vmatpush3.msra.mxu1 %v120_v21  ;;  %426 = vmatpush3.msra.mxu0 %v216_v32 }
  0x30   :  { %427 = vmatprep.subr.mxu0 %v493_v0 }
  0x31   :  { %428 = vmatpush3.msra.mxu0 %v215_v33 }
  0x32   :  { %429 = vmatprep.subr.mxu0 %v493_v0 }
  0x33   :  { %430 = vmatpush3.msra.mxu0 %v214_v34 }
  0x34   :  { %431 = vmatprep.subr.mxu0 %v493_v0 }
  0x35   :  { %432 = vmatpush3.msra.mxu0 %v213_v44 }
  0x36   :  { %433 = vmatprep.subr.mxu0 %v493_v0 }
  0x37   :  { %434 = vmatpush3.msra.mxu0 %v212_v45 }
  0x38   :  { %435 = vmatprep.subr.mxu0 %v493_v0 }
  0x39   :  { %436 = vmatpush3.msra.mxu0 %v211_v46 }
  0xd8   :  { %v115_v40 = vpop.f32.mrf.mxu0 }
  0xd9   :  { %v116_v41 = vadd.f32 %v115_v40, %v44_v39 }
  0xda   :  { %v369_v42 = vpop.f32.mrf.mxu0 }
  0xdb   :  { %v119_v43 = vmax.f32 %v116_v41, 0.0 }
  0xdd   :  { %403 = vmatmul.mubr.f32.vlgmr.msra.gmra.mxu1 %v119_v43 }
 0x19d   :  { %v206_v49 = vpop.f32.mrf.mxu1 }
 0x19e   :  { %v207_v50 = vadd.f32 %v206_v49, %v139_v48 }
 0x19f   :  { %v404_v51 = vpop.f32.mrf.mxu1 }
 0x1a0   :  { %v210_v52 = vmax.f32 %v207_v50, 0.0 }
 0x1a2   :  { %438 = vmatmul.mubr.f32.vlgmr.msra.gmra.mxu0 %v210_v52 }
 0x262   :  { %v297_v55 = vpop.f32.mrf.mxu0 }
 0x263   :  { %v298_v56 = vadd.f32 %v297_v55, %v230_v54 }
 0x264   :  { %v439_v57 = vpop.f32.mrf.mxu0 }
 0x265   :  { %v301_v58 = vadd.f32 %v298_v56, %v550_v8 }
 0x267   :  { %303 = vst.msk [vmem:[#allocation5] sm:$0xff] %vm302_vm2, %v301_v58 }
 0x268   :  { %477 = shalt.err (!%p474_p9)
}
 0x269   :  { %313 = dma.vmem_to_hbm [thread:$0]  %s311_s2, 128, %s685_s5, [#allocation4]  }
 0x26a   :  { %488 = dma.done.wait [#allocation4], 128  }
 0x26b   :  { %489 = vsyncadd [#allocation4], 4294967168 }
 0x26c   :  { %317 = vsyncpa [#allocation3], 1 }
 0x26d   :  { %318 = vsyncpa [#allocation4], 1 }

// kernel: nndense_forward.1
= control target key start
LH: loop header
LB: loop body
LE: loop exit
PB: predicated region body
PF: predicated region fallthrough
CT: control target
= control target key end

     0   :  { %10 = vsyncpa [#allocation3], 0  ;;  %s680_s0 = inlined_call_operand.vmem [shape: f32[8,32], index: 0, kind: input, shape index: {}]   ;;  %s681_s1 = inlined_call_operand.hbm [shape: f32[32,128], index: 1, kind: input, shape index: {}]   ;;  %s682_s2 = inlined_call_operand.vmem [shape: f32[128,128], index: 2, kind: input, shape index: {}]   ;;  %s683_s3 = inlined_call_operand.vmem [shape: f32[128,16], index: 3, kind: input, shape index: {}]   ;;  %s684_s4 = inlined_call_operand.vmem [shape: f32[3,128], index: 4, kind: input, shape index: {}]   ;;  %s685_s5 = inlined_call_operand.hbm [shape: f32[8,16], index: 5, kind: output, shape index: {}]  }
   0x1   :  { %11 = vsyncpa [#allocation4], 0  ;;  %s490_s18 = smov [#allocation2]  }
   0x2   :  { %s19_s19 = sshll.u32 %s490_s18, 4  ;;  %s20_s19 = int_to_ptr.vmem [resolvable:$true] %s19_s19 }
   0x3   :  { %s454_s20 = scalar_lea.vmem %s20_s19, 512  ;;  %p459_p1 = scmp.lt.s32.totalorder %s20_s19, %s20_s19 }
   0x4   :  { %p455_p0 = scmp.ne.s32.totalorder %s20_s19, %s454_s20  ;;  %p460_p2 = scmp.lt.s32.totalorder %s454_s20, %s454_s20 }
   0x6   :  { %p461_p3 = por %p460_p2, %p459_p1 }
   0x8   :  { %p462_p4 = pnand %p461_p3, %p455_p0 }
   0xa   :  { %465 = shalt.err (!%p462_p4)
}
   0xb   :  { %s491_s21 = smov 128   ;;  %s492_s22 = smov 8  }
   0xc   :  { %25 = dma.hbm_to_vmem [thread:$0]  %s681_s1, 512, %s20_s19, [#allocation3], %s491_s21, %s491_s21, %s492_s22  }
   0xd   :  { %486 = dma.done.wait [#allocation3], 512  }
   0xe   :  { %487 = vsyncadd [#allocation3], 4294966784  ;;  %v493_v0 = vmov 0.0   ;;  %vm494_vm0 = vmmov 0   ;;  %v40_v1 = vld [vmem:[#allocation2 + $0x18] sm:$0xff]  ;;  %v39_v2 = vld [vmem:[#allocation2 + $0x10] sm:$0xff]  ;;  %v41_v35 = vlaneseq }
   0xf   :  { %359 = vmatprep.subr.mxu0 %v493_v0  ;;  %367 = vmatprep.mubr.msk.f32.mxu0 %vm494_vm0, %v493_v0  ;;  %v135_v3 = vld [vmem:[%s682_s2 + $0x78] sm:$0xff]  ;;  %v38_v4 = vld [vmem:[#allocation2 + $0x8] sm:$0xff]  ;;  %v134_v5 = vld [vmem:[%s682_s2 + $0x70] sm:$0xff]  ;;  %vm45_vm1 = vcmask 261120   ;;  %vm302_vm2 = vcmask 130048  }
  0x10   :  { %370 = vmatprep.subr.mxu1 %v493_v0  ;;  %402 = vmatprep.mubr.msk.f32.mxu1 %vm494_vm0, %v493_v0  ;;  %v133_v6 = vld [vmem:[%s682_s2 + $0x68] sm:$0xff]  ;;  %v37_v7 = vld [vmem:[#allocation2] sm:$0xff]  ;;  %v131_v10 = vld [vmem:[%s682_s2 + $0x58] sm:$0xff]  ;;  %v42_v36 = vshrl.u32 %v41_v35, 7 }
  0x11   :  { %360 = vmatpush3.msra.mxu0 %v40_v1  ;;  %371 = vmatpush3.msra.mxu1 %v135_v3  ;;  %v550_v8 = vld [vmem:[%s680_s0] sm:$0xff]  ;;  %v130_v11 = vld [vmem:[%s682_s2 + $0x50] sm:$0xff]  ;;  %v129_v12 = vld [vmem:[%s682_s2 + $0x48] sm:$0xff]  ;;  %s495_s0 = smov [#allocation5]  }
  0x12   :  { %361 = vmatprep.subr.mxu0 %v493_v0  ;;  %372 = vmatprep.subr.mxu1 %v493_v0  ;;  %v132_v9 = vld [vmem:[%s682_s2 + $0x60] sm:$0xff]  ;;  %v127_v14 = vld [vmem:[%s682_s2 + $0x38] sm:$0xff]  ;;  %v126_v15 = vld [vmem:[%s682_s2 + $0x30] sm:$0xff]  ;;  %v43_v37 = vsub.s32 0, %v42_v36  ;;  %v138_v47 = vsub.s32 1, %v42_v36  ;;  %v229_v53 = vsub.s32 2, %v42_v36 }
  0x13   :  { %362 = vmatpush3.msra.mxu0 %v39_v2  ;;  %373 = vmatpush3.msra.mxu1 %v134_v5  ;;  %v128_v13 = vld [vmem:[%s682_s2 + $0x40] sm:$0xff]  ;;  %v125_v16 = vld [vmem:[%s682_s2 + $0x28] sm:$0xff]  ;;  %v123_v18 = vld [vmem:[%s682_s2 + $0x18] sm:$0xff] }
  0x14   :  { %363 = vmatprep.subr.mxu0 %v493_v0  ;;  %374 = vmatprep.subr.mxu1 %v493_v0  ;;  %v124_v17 = vld [vmem:[%s682_s2 + $0x20] sm:$0xff]  ;;  %v122_v19 = vld [vmem:[%s682_s2 + $0x10] sm:$0xff]  ;;  %v121_v20 = vld [vmem:[%s682_s2 + $0x8] sm:$0xff] }
  0x15   :  { %364 = vmatpush3.msra.mxu0 %v38_v4  ;;  %375 = vmatpush3.msra.mxu1 %v133_v6  ;;  %v120_v21 = vld [vmem:[%s682_s2] sm:$0xff]  ;;  %v226_v22 = vld [vmem:[%s683_s3 + $0x78] sm:$0xff]  ;;  %v225_v23 = vld [vmem:[%s683_s3 + $0x70] sm:$0xff]  ;;  %s310_s2 = sshll.u32 %s495_s0, 4  ;;  %s311_s2 = int_to_ptr.vmem [resolvable:$true] %s310_s2 }
  0x16   :  { %365 = vmatprep.subr.mxu0 %v493_v0  ;;  %376 = vmatprep.subr.mxu1 %v493_v0  ;;  %v224_v24 = vld [vmem:[%s683_s3 + $0x68] sm:$0xff]  ;;  %v223_v25 = vld [vmem:[%s683_s3 + $0x60] sm:$0xff]  ;;  %v222_v26 = vld [vmem:[%s683_s3 + $0x58] sm:$0xff]  ;;  %p471_p6 = scmp.lt.s32.totalorder %s311_s2, %s311_s2 }
  0x17   :  { %366 = vmatpush3.msra.mxu0 %v37_v7  ;;  %377 = vmatpush3.msra.mxu1 %v132_v9  ;;  %v221_v27 = vld [vmem:[%s683_s3 + $0x50] sm:$0xff]  ;;  %v220_v28 = vld [vmem:[%s683_s3 + $0x48] sm:$0xff]  ;;  %v219_v29 = vld [vmem:[%s683_s3 + $0x40] sm:$0xff] }
  0x18   :  { %368 = vmatmul.mubr.msk.f32.vlgmr.msra.gmra.mxu0 %vm45_vm1, %v550_v8  ;;  %378 = vmatprep.subr.mxu1 %v493_v0  ;;  %v218_v30 = vld [vmem:[%s683_s3 + $0x38] sm:$0xff]  ;;  %v217_v31 = vld [vmem:[%s683_s3 + $0x30] sm:$0xff]  ;;  %v216_v32 = vld [vmem:[%s683_s3 + $0x28] sm:$0xff] }
  0x19   :  { %405 = vmatprep.subr.mxu0 %v493_v0  ;;  %379 = vmatpush3.msra.mxu1 %v131_v10  ;;  %v215_v33 = vld [vmem:[%s683_s3 + $0x20] sm:$0xff]  ;;  %v214_v34 = vld [vmem:[%s683_s3 + $0x18] sm:$0xff]  ;;  %v213_v44 = vld [vmem:[%s683_s3 + $0x10] sm:$0xff] }
  0x1a   :  { %437 = vmatprep.mubr.msk.f32.mxu0 %vm494_vm0, %v493_v0  ;;  %380 = vmatprep.subr.mxu1 %v493_v0  ;;  %v36_v38 = vld [vmem:[%s684_s4] sm:$0x7]  ;;  %v212_v45 = vld [vmem:[%s683_s3 + $0x8] sm:$0xff] }
  0x1b   :  { %381 = vmatpush3.msra.mxu1 %v130_v11  ;;  %406 = vmatpush3.msra.mxu0 %v226_v22  ;;  %v44_v39 = vrot.slane %v36_v38, %v43_v37  ;;  %v211_v46 = vld [vmem:[%s683_s3] sm:$0xff]  ;;  %v139_v48 = vrot.slane %v36_v38, %v138_v47  ;;  %v230_v54 = vrot.slane %v36_v38, %v229_v53  ;;  %s466_s3 = scalar_lea.vmem %s311_s2, 128 }
  0x1c   :  { %382 = vmatprep.subr.mxu1 %v493_v0  ;;  %407 = vmatprep.subr.mxu0 %v493_v0  ;;  %p467_p5 = scmp.ne.s32.totalorder %s311_s2, %s466_s3  ;;  %p472_p7 = scmp.lt.s32.totalorder %s466_s3, %s466_s3 }
  0x1d   :  { %383 = vmatpush3.msra.mxu1 %v129_v12  ;;  %408 = vmatpush3.msra.mxu0 %v225_v23 }
  0x1e   :  { %384 = vmatprep.subr.mxu1 %v493_v0  ;;  %409 = vmatprep.subr.mxu0 %v493_v0  ;;  %p473_p8 = por %p472_p7, %p471_p6 }
  0x1f   :  { %385 = vmatpush3.msra.mxu1 %v128_v13  ;;  %410 = vmatpush3.msra.mxu0 %v224_v24 }
  0x20   :  { %386 = vmatprep.subr.mxu1 %v493_v0  ;;  %411 = vmatprep.subr.mxu0 %v493_v0  ;;  %p474_p9 = pnand %p473_p8, %p467_p5 }
  0x21   :  { %387 = vmatpush3.msra.mxu1 %v127_v14  ;;  %412 = vmatpush3.msra.mxu0 %v223_v25 }
  0x22   :  { %388 = vmatprep.subr.mxu1 %v493_v0  ;;  %413 = vmatprep.subr.mxu0 %v493_v0 }
  0x23   :  { %389 = vmatpush3.msra.mxu1 %v126_v15  ;;  %414 = vmatpush3.msra.mxu0 %v222_v26 }
  0x24   :  { %390 = vmatprep.subr.mxu1 %v493_v0  ;;  %415 = vmatprep.subr.mxu0 %v493_v0 }
  0x25   :  { %391 = vmatpush3.msra.mxu1 %v125_v16  ;;  %416 = vmatpush3.msra.mxu0 %v221_v27 }
  0x26   :  { %392 = vmatprep.subr.mxu1 %v493_v0  ;;  %417 = vmatprep.subr.mxu0 %v493_v0 }
  0x27   :  { %393 = vmatpush3.msra.mxu1 %v124_v17  ;;  %418 = vmatpush3.msra.mxu0 %v220_v28 }
  0x28   :  { %394 = vmatprep.subr.mxu1 %v493_v0  ;;  %419 = vmatprep.subr.mxu0 %v493_v0 }
  0x29   :  { %395 = vmatpush3.msra.mxu1 %v123_v18  ;;  %420 = vmatpush3.msra.mxu0 %v219_v29 }
  0x2a   :  { %396 = vmatprep.subr.mxu1 %v493_v0  ;;  %421 = vmatprep.subr.mxu0 %v493_v0 }
  0x2b   :  { %397 = vmatpush3.msra.mxu1 %v122_v19  ;;  %422 = vmatpush3.msra.mxu0 %v218_v30 }
  0x2c   :  { %398 = vmatprep.subr.mxu1 %v493_v0  ;;  %423 = vmatprep.subr.mxu0 %v493_v0 }
  0x2d   :  { %399 = vmatpush3.msra.mxu1 %v121_v20  ;;  %424 = vmatpush3.msra.mxu0 %v217_v31 }
  0x2e   :  { %400 = vmatprep.subr.mxu1 %v493_v0  ;;  %425 = vmatprep.subr.mxu0 %v493_v0 }
  0x2f   :  { %401 = vmatpush3.msra.mxu1 %v120_v21  ;;  %426 = vmatpush3.msra.mxu0 %v216_v32 }
  0x30   :  { %427 = vmatprep.subr.mxu0 %v493_v0 }
  0x31   :  { %428 = vmatpush3.msra.mxu0 %v215_v33 }
  0x32   :  { %429 = vmatprep.subr.mxu0 %v493_v0 }
  0x33   :  { %430 = vmatpush3.msra.mxu0 %v214_v34 }
  0x34   :  { %431 = vmatprep.subr.mxu0 %v493_v0 }
  0x35   :  { %432 = vmatpush3.msra.mxu0 %v213_v44 }
  0x36   :  { %433 = vmatprep.subr.mxu0 %v493_v0 }
  0x37   :  { %434 = vmatpush3.msra.mxu0 %v212_v45 }
  0x38   :  { %435 = vmatprep.subr.mxu0 %v493_v0 }
  0x39   :  { %436 = vmatpush3.msra.mxu0 %v211_v46 }
  0xd8   :  { %v115_v40 = vpop.f32.mrf.mxu0 }
  0xd9   :  { %v116_v41 = vadd.f32 %v115_v40, %v44_v39 }
  0xda   :  { %v369_v42 = vpop.f32.mrf.mxu0 }
  0xdb   :  { %v119_v43 = vmax.f32 %v116_v41, 0.0 }
  0xdd   :  { %403 = vmatmul.mubr.f32.vlgmr.msra.gmra.mxu1 %v119_v43 }
 0x19d   :  { %v206_v49 = vpop.f32.mrf.mxu1 }
 0x19e   :  { %v207_v50 = vadd.f32 %v206_v49, %v139_v48 }
 0x19f   :  { %v404_v51 = vpop.f32.mrf.mxu1 }
 0x1a0   :  { %v210_v52 = vmax.f32 %v207_v50, 0.0 }
 0x1a2   :  { %438 = vmatmul.mubr.f32.vlgmr.msra.gmra.mxu0 %v210_v52 }
 0x262   :  { %v297_v55 = vpop.f32.mrf.mxu0 }
 0x263   :  { %v298_v56 = vadd.f32 %v297_v55, %v230_v54 }
 0x264   :  { %v439_v57 = vpop.f32.mrf.mxu0 }
 0x265   :  { %v301_v58 = vadd.f32 %v298_v56, %v550_v8 }
 0x267   :  { %303 = vst.msk [vmem:[#allocation5] sm:$0xff] %vm302_vm2, %v301_v58 }
 0x268   :  { %477 = shalt.err (!%p474_p9)
}
 0x269   :  { %313 = dma.vmem_to_hbm [thread:$0]  %s311_s2, 128, %s685_s5, [#allocation4]  }
 0x26a   :  { %488 = dma.done.wait [#allocation4], 128  }
 0x26b   :  { %489 = vsyncadd [#allocation4], 4294967168 }
 0x26c   :  { %317 = vsyncpa [#allocation3], 1 }
 0x26d   :  { %318 = vsyncpa [#allocation4], 1 }

</bundles_post_ra>
